<compile_context>
chip_gen: v6e
topology: v6e:2x2x1
jax: 0.10.0
libtpu: 0.0.40
codegen_flags: <defaults>
</compile_context>

<pallas_src>
import functools

import jax
import jax.numpy as jnp
from jax.experimental import pallas as pl
from jax.experimental.pallas import tpu as pltpu


# ---------------------------------------------------------------------------
# Small-batch path: single invocation, whole arrays resident in VMEM.
# ---------------------------------------------------------------------------
def _policy_kernel_small(x_ref, w1_ref, b1_ref, w2_ref, b2_ref, o_ref):
    # Linear(2,128) + ReLU: K=2 contraction as VPU broadcast FMAs (skip MXU).
    h = b1_ref[...]                                   # (1, H) bias seed
    for k in range(x_ref.shape[1]):                   # static trip count (=2)
        h = h + x_ref[:, k:k + 1] * w1_ref[k:k + 1, :]
    h = jnp.maximum(h, 0.0)                           # (B, H) f32

    # Linear(128,4): K=128 contraction on the MXU, f32 accumulate.
    logits = jnp.dot(h, w2_ref[...], preferred_element_type=jnp.float32)
    logits = logits + b2_ref[...]                     # (B, out)

    # LogSoftmax over dim 0 (batch axis), numerically stable.
    m = jnp.max(logits, axis=0, keepdims=True)
    z = logits - m
    lse = jnp.log(jnp.sum(jnp.exp(z), axis=0, keepdims=True))
    o_ref[...] = (z - lse).astype(o_ref.dtype)


def _forward_small(x, w1, b1, w2, b2):
    B = x.shape[0]
    out_dim = w2.shape[1]
    vmem = pl.BlockSpec(memory_space=pltpu.MemorySpace.VMEM)
    return pl.pallas_call(
        _policy_kernel_small,
        out_shape=jax.ShapeDtypeStruct((B, out_dim), jnp.float32),
        in_specs=[vmem, vmem, vmem, vmem, vmem],
        out_specs=vmem,
    )(x, w1, b1, w2, b2)


# ---------------------------------------------------------------------------
# Large-batch path: grid over batch tiles, pinned weights, online dim-0 softmax.
# ---------------------------------------------------------------------------
def _policy_kernel_tiled(x_ref, w1_ref, b1_ref, w2_ref, b2_ref,
                         logits_ref, stats_ref, m_sc, l_sc):
    i = pl.program_id(0)

    @pl.when(i == 0)
    def _():
        m_sc[...] = jnp.full_like(m_sc, -jnp.inf)
        l_sc[...] = jnp.zeros_like(l_sc)

    # Layer 1: VPU broadcast FMAs (K=2), seeded with the bias.
    h = b1_ref[...]
    for k in range(x_ref.shape[1]):
        h = h + x_ref[:, k:k + 1] * w1_ref[k:k + 1, :]
    h = jnp.maximum(h, 0.0)                           # (TILE_B, H)

    # Layer 2: MXU, f32 accumulate.  (bf16 operands would be a v6e micro-opt;
    # kept f32 for PyTorch parity.)
    logits = jnp.dot(h, w2_ref[...], preferred_element_type=jnp.float32)
    logits = logits + b2_ref[...]                     # (TILE_B, out)
    logits_ref[...] = logits.astype(logits_ref.dtype)

    # Online dim-0 (batch-axis) softmax stats accumulated across the grid.
    tile_max = jnp.max(logits, axis=0, keepdims=True)           # (1, out)
    m_new = jnp.maximum(m_sc[...], tile_max)
    l_sc[...] = (l_sc[...] * jnp.exp(m_sc[...] - m_new)
                 + jnp.sum(jnp.exp(logits - m_new), axis=0, keepdims=True))
    m_sc[...] = m_new

    @pl.when(i == pl.num_programs(0) - 1)
    def _():
        stats_ref[...] = m_sc[...] + jnp.log(l_sc[...])


def _forward_tiled(x, w1, b1, w2, b2, *, tile_b):
    B, in_dim = x.shape
    hidden, out_dim = w2.shape
    assert B % tile_b == 0 and tile_b % 8 == 0

    logits, stats = pl.pallas_call(
        _policy_kernel_tiled,
        out_shape=(jax.ShapeDtypeStruct((B, out_dim), jnp.float32),
                   jax.ShapeDtypeStruct((1, out_dim), jnp.float32)),
        grid=(B // tile_b,),
        in_specs=[
            pl.BlockSpec((tile_b, in_dim), lambda i: (i, 0)),   # x tile
            pl.BlockSpec((in_dim, hidden), lambda i: (0, 0)),   # W1 pinned
            pl.BlockSpec((1, hidden), lambda i: (0, 0)),        # b1 pinned
            pl.BlockSpec((hidden, out_dim), lambda i: (0, 0)),  # W2 pinned
            pl.BlockSpec((1, out_dim), lambda i: (0, 0)),       # b2 pinned
        ],
        out_specs=(
            pl.BlockSpec((tile_b, out_dim), lambda i: (i, 0)),  # logits tile
            pl.BlockSpec((1, out_dim), lambda i: (0, 0)),       # softmax stats
        ),
        scratch_shapes=[pltpu.VMEM((1, out_dim), jnp.float32),  # running max
                        pltpu.VMEM((1, out_dim), jnp.float32)], # running sumexp
        # Batch axis carries the dim-0 softmax accumulator -> "arbitrary".
        compiler_params=pltpu.CompilerParams(
            dimension_semantics=("arbitrary",)),
    )(x, w1, b1, w2, b2)

    # Cheap second pass: out = logits - (m + log l), one broadcast subtract.
    return logits - stats


# ---------------------------------------------------------------------------
# Public forward
# ---------------------------------------------------------------------------
def policy_network_forward(x, w1, b1, w2, b2, *, tile_b=1024):
    """LogSoftmax(dim=0)(ReLU(x @ W1 + b1) @ W2 + b2).  Weights transposed vs
    torch.nn.Linear.weight: W1 (in, hidden), W2 (hidden, out)."""
    B = x.shape[0]
    # tile_b sized for all generations (even 8K rows of (TILE_B,128) f32 is
    # ~4 MiB, well under v7x's 32 MiB scoped VMEM).
    if B >= 2 * tile_b and B % tile_b == 0:
        return _forward_tiled(x, w1, b1, w2, b2, tile_b=tile_b)
    return _forward_small(x, w1, b1, w2, b2)


# ---------------------------------------------------------------------------
# Init / reference / test
# ---------------------------------------------------------------------------
def init_params(key, input_dim=2, hidden_dim=128, output_dim=4):
    # torch.nn.Linear-style init: U(-1/sqrt(fan_in), 1/sqrt(fan_in)).
    k1, k2, k3, k4 = jax.random.split(key, 4)
    bound1 = 1.0 / (input_dim ** 0.5)
    bound2 = 1.0 / (hidden_dim ** 0.5)
    w1 = jax.random.uniform(k1, (input_dim, hidden_dim), jnp.float32, -bound1, bound1)
    b1 = jax.random.uniform(k2, (1, hidden_dim), jnp.float32, -bound1, bound1)
    w2 = jax.random.uniform(k3, (hidden_dim, output_dim), jnp.float32, -bound2, bound2)
    b2 = jax.random.uniform(k4, (1, output_dim), jnp.float32, -bound2, bound2)
    return w1, b1, w2, b2


def reference_forward(x, w1, b1, w2, b2):
    # Pure-JAX reference in full f32 precision (matches the f32 PyTorch module).
    h = jnp.maximum(jnp.dot(x, w1, precision="highest") + b1, 0.0)
    logits = jnp.dot(h, w2, precision="highest") + b2
    return jax.nn.log_softmax(logits, axis=0)


if __name__ == "__main__":
    key = jax.random.PRNGKey(0)
    k_small, k_big, k_p = jax.random.split(key, 3)

    input_dim, hidden_dim, output_dim = 2, 128, 4
    w1, b1, w2, b2 = init_params(k_p, input_dim, hidden_dim, output_dim)

    # Tolerance accommodates MXU bf16-pass rounding of the f32 second matmul.
    ATOL, RTOL = 5e-3, 1e-3

    # --- small-batch path (matches typical module usage, B=8) ---
    B_small = 8
    x_small = jax.random.normal(k_small, (B_small, input_dim), jnp.float32)
    fwd = jax.jit(policy_network_forward)
    out_small = jax.block_until_ready(fwd(x_small, w1, b1, w2, b2))
    ref_small = reference_forward(x_small, w1, b1, w2, b2)
    assert out_small.shape == (B_small, output_dim)
    assert jnp.allclose(out_small, ref_small, atol=ATOL, rtol=RTOL), \
        "small-batch mismatch vs reference"

    # --- batch-tiled path (grid over batch, pinned weights, online softmax) ---
    B_big, TILE_B = 512, 128
    x_big = jax.random.normal(k_big, (B_big, input_dim), jnp.float32)
    fwd_tiled = jax.jit(functools.partial(policy_network_forward, tile_b=TILE_B))
    out_big = jax.block_until_ready(fwd_tiled(x_big, w1, b1, w2, b2))
    ref_big = reference_forward(x_big, w1, b1, w2, b2)
    assert out_big.shape == (B_big, output_dim)
    assert jnp.allclose(out_big, ref_big, atol=ATOL, rtol=RTOL), \
        "tiled mismatch vs reference"

    print("KERNEL_OK")
</pallas_src>

<mosaic_0001>
module attributes {stable_mosaic.version = 11 : i64} {
  func.func @_policy_kernel_small(%arg0: memref<8x2xf32, #tpu.memory_space<vmem>>, %arg1: memref<2x128xf32, #tpu.memory_space<vmem>>, %arg2: memref<1x128xf32, #tpu.memory_space<vmem>>, %arg3: memref<128x4xf32, #tpu.memory_space<vmem>>, %arg4: memref<1x4xf32, #tpu.memory_space<vmem>>, %arg5: memref<8x4xf32, #tpu.memory_space<vmem>>) attributes {dimension_semantics = [], scalar_prefetch = 0 : i64, scratch_operands = 0 : i64, tpu.core_type = #tpu.core_type<tc>} {
    %c0 = arith.constant 0 : index
    %c0_0 = arith.constant 0 : index
    %0 = vector.load %arg2[%c0, %c0_0] : memref<1x128xf32, #tpu.memory_space<vmem>>, vector<1x128xf32>
    %c0_1 = arith.constant 0 : index
    %c0_2 = arith.constant 0 : index
    %1 = vector.load %arg0[%c0_1, %c0_2] : memref<8x2xf32, #tpu.memory_space<vmem>>, vector<8x1xf32>
    %c0_3 = arith.constant 0 : index
    %c0_4 = arith.constant 0 : index
    %2 = vector.load %arg1[%c0_3, %c0_4] : memref<2x128xf32, #tpu.memory_space<vmem>>, vector<1x128xf32>
    %3 = vector.broadcast %1 : vector<8x1xf32> to vector<8x128xf32>
    %4 = vector.broadcast %2 : vector<1x128xf32> to vector<8x128xf32>
    %5 = arith.mulf %3, %4 : vector<8x128xf32>
    %6 = vector.broadcast %0 : vector<1x128xf32> to vector<8x128xf32>
    %7 = arith.addf %6, %5 : vector<8x128xf32>
    %c0_5 = arith.constant 0 : index
    %c1 = arith.constant 1 : index
    %8 = vector.load %arg0[%c0_5, %c1] : memref<8x2xf32, #tpu.memory_space<vmem>>, vector<8x1xf32>
    %c1_6 = arith.constant 1 : index
    %c0_7 = arith.constant 0 : index
    %9 = vector.load %arg1[%c1_6, %c0_7] : memref<2x128xf32, #tpu.memory_space<vmem>>, vector<1x128xf32>
    %10 = vector.broadcast %8 : vector<8x1xf32> to vector<8x128xf32>
    %11 = vector.broadcast %9 : vector<1x128xf32> to vector<8x128xf32>
    %12 = arith.mulf %10, %11 : vector<8x128xf32>
    %13 = arith.addf %7, %12 : vector<8x128xf32>
    %cst = arith.constant 0.000000e+00 : f32
    %14 = vector.broadcast %cst : f32 to vector<8x128xf32>
    %15 = arith.maximumf %13, %14 : vector<8x128xf32>
    %c0_8 = arith.constant 0 : index
    %c0_9 = arith.constant 0 : index
    %16 = vector.load %arg3[%c0_8, %c0_9] : memref<128x4xf32, #tpu.memory_space<vmem>>, vector<128x4xf32>
    %cst_10 = arith.constant dense<0.000000e+00> : vector<8x4xf32>
    %17 = tpu.matmul %15, %16, %cst_10 {dimension_numbers = #tpu.dot_dimension_numbers<[1], [0], [0], [1], [0, 0, 1, 1], [], []>} : vector<8x128xf32>, vector<128x4xf32>, vector<8x4xf32> -> vector<8x4xf32>
    %c0_11 = arith.constant 0 : index
    %c0_12 = arith.constant 0 : index
    %18 = vector.load %arg4[%c0_11, %c0_12] : memref<1x4xf32, #tpu.memory_space<vmem>>, vector<1x4xf32>
    %19 = vector.broadcast %18 : vector<1x4xf32> to vector<8x4xf32>
    %20 = arith.addf %17, %19 : vector<8x4xf32>
    %cst_13 = arith.constant dense<0xFF800000> : vector<4xf32>
    %21 = vector.multi_reduction <maximumf>, %20, %cst_13 [0] : vector<8x4xf32> to vector<4xf32>
    %22 = vector.shape_cast %21 : vector<4xf32> to vector<1x4xf32>
    %23 = vector.broadcast %22 : vector<1x4xf32> to vector<8x4xf32>
    %24 = arith.subf %20, %23 : vector<8x4xf32>
    %25 = math.exp %24 : vector<8x4xf32>
    %cst_14 = arith.constant dense<0.000000e+00> : vector<4xf32>
    %26 = vector.multi_reduction <add>, %25, %cst_14 [0] : vector<8x4xf32> to vector<4xf32>
    %27 = vector.shape_cast %26 : vector<4xf32> to vector<1x4xf32>
    %28 = math.log %27 : vector<1x4xf32>
    %29 = vector.broadcast %28 : vector<1x4xf32> to vector<8x4xf32>
    %30 = arith.subf %24, %29 : vector<8x4xf32>
    %c0_15 = arith.constant 0 : index
    %c0_16 = arith.constant 0 : index
    %31 = vector.load %arg5[%c0_15, %c0_16] : memref<8x4xf32, #tpu.memory_space<vmem>>, vector<8x4xf32>
    tpu.vector_store %arg5[%c0_15, %c0_16], %30 {strides = array<i32>} : memref<8x4xf32, #tpu.memory_space<vmem>>, vector<8x4xf32>,
    return
  }
}

</mosaic_0001>

<bundles_post_ra>
// kernel: policy_network_forward.1
= control target key start
LH: loop header
LB: loop body
LE: loop exit
PB: predicated region body
PF: predicated region fallthrough
CT: control target
= control target key end

     0   :  { %v237_v0 = vmov 0   ;;  %v238_v2 = vmov 0.0   ;;  %v239_v7 = vmov 1   ;;  %vm240_vm0 = vmmov 0   ;;  %s340_s0 = inlined_call_operand.vmem [shape: f32[8,2], index: 0, kind: input, shape index: {}]   ;;  %s341_s3 = inlined_call_operand.vmem [shape: f32[128,4], index: 3, kind: input, shape index: {}]   ;;  %s342_s1 = inlined_call_operand.vmem [shape: f32[2,128], index: 1, kind: input, shape index: {}]   ;;  %s343_s2 = inlined_call_operand.vmem [shape: f32[1,128], index: 2, kind: input, shape index: {}]   ;;  %s344_s4 = inlined_call_operand.vmem [shape: f32[1,4], index: 4, kind: input, shape index: {}]   ;;  %s345_s5 = inlined_call_operand.vmem [shape: f32[8,4], index: 5, kind: output, shape index: {}]  }
   0x1   :  { %231 = vset.pattern.permute.xlu0 %v237_v0  ;;  %v21_v1 = vld [vmem:[%s340_s0] sm:$0xff]  ;;  %192 = vmatprep.subr.mxu0 %v238_v2  ;;  %v67_v3 = vld [vmem:[%s341_s3 + $0x78] sm:$0xff]  ;;  %v66_v4 = vld [vmem:[%s341_s3 + $0x70] sm:$0xff]  ;;  %vm145_vm1 = vcmask 31744  }
   0x2   :  { %25 = vperm.xlu0 %231, %v21_v1   ;;  %193 = vmatpush3.msra.mxu0 %v67_v3  ;;  %v65_v5 = vld [vmem:[%s341_s3 + $0x68] sm:$0xff]  ;;  %v64_v6 = vld [vmem:[%s341_s3 + $0x60] sm:$0xff]  ;;  %v63_v8 = vld [vmem:[%s341_s3 + $0x58] sm:$0xff] }
   0x3   :  { %194 = vmatprep.subr.mxu0 %v238_v2  ;;  %224 = vmatprep.mubr.msk.f32.mxu0 %vm240_vm0, %v238_v2  ;;  %v62_v9 = vld [vmem:[%s341_s3 + $0x50] sm:$0xff]  ;;  %v61_v10 = vld [vmem:[%s341_s3 + $0x48] sm:$0xff]  ;;  %v60_v11 = vld [vmem:[%s341_s3 + $0x40] sm:$0xff] }
   0x4   :  { %195 = vmatpush3.msra.mxu0 %v66_v4  ;;  %v59_v12 = vld [vmem:[%s341_s3 + $0x38] sm:$0xff]  ;;  %v58_v13 = vld [vmem:[%s341_s3 + $0x30] sm:$0xff]  ;;  %v57_v14 = vld [vmem:[%s341_s3 + $0x28] sm:$0xff] }
   0x5   :  { %196 = vmatprep.subr.mxu0 %v238_v2  ;;  %v56_v15 = vld [vmem:[%s341_s3 + $0x20] sm:$0xff]  ;;  %v55_v16 = vld [vmem:[%s341_s3 + $0x18] sm:$0xff]  ;;  %v54_v17 = vld [vmem:[%s341_s3 + $0x10] sm:$0xff] }
   0x6   :  { %232 = vset.pattern.permute.xlu0 %v239_v7  ;;  %197 = vmatpush3.msra.mxu0 %v65_v5  ;;  %v53_v18 = vld [vmem:[%s341_s3 + $0x8] sm:$0xff]  ;;  %v52_v19 = vld [vmem:[%s341_s3] sm:$0xff] }
   0x7   :  { %42 = vperm.xlu0 %232, %v21_v1   ;;  %198 = vmatprep.subr.mxu0 %v238_v2  ;;  %v171_v20 = vld [vmem:[%s342_s1] ss:$0 sm:$0xff]  ;;  %v173_v24 = vld [vmem:[%s342_s1 + $0x1] ss:$0 sm:$0xff] }
   0x8   :  { %199 = vmatpush3.msra.mxu0 %v64_v6  ;;  %v172_v23 = vld [vmem:[%s343_s2] ss:$0 sm:$0xff] }
   0x9   :  { %200 = vmatprep.subr.mxu0 %v238_v2  ;;  %v174_v30 = vld [vmem:[%s344_s4] ss:$0 sm:$0xff] }
   0xa   :  { %201 = vmatpush3.msra.mxu0 %v63_v8 }
   0xb   :  { %202 = vmatprep.subr.mxu0 %v238_v2 }
   0xc   :  { %203 = vmatpush3.msra.mxu0 %v62_v9 }
   0xd   :  { %204 = vmatprep.subr.mxu0 %v238_v2 }
   0xe   :  { %205 = vmatpush3.msra.mxu0 %v61_v10 }
   0xf   :  { %206 = vmatprep.subr.mxu0 %v238_v2 }
  0x10   :  { %207 = vmatpush3.msra.mxu0 %v60_v11 }
  0x11   :  { %208 = vmatprep.subr.mxu0 %v238_v2 }
  0x12   :  { %209 = vmatpush3.msra.mxu0 %v59_v12 }
  0x13   :  { %210 = vmatprep.subr.mxu0 %v238_v2 }
  0x14   :  { %211 = vmatpush3.msra.mxu0 %v58_v13 }
  0x15   :  { %212 = vmatprep.subr.mxu0 %v238_v2 }
  0x16   :  { %213 = vmatpush3.msra.mxu0 %v57_v14 }
  0x17   :  { %214 = vmatprep.subr.mxu0 %v238_v2 }
  0x18   :  { %215 = vmatpush3.msra.mxu0 %v56_v15 }
  0x19   :  { %216 = vmatprep.subr.mxu0 %v238_v2 }
  0x1a   :  { %217 = vmatpush3.msra.mxu0 %v55_v16 }
  0x1b   :  { %218 = vmatprep.subr.mxu0 %v238_v2 }
  0x1c   :  { %219 = vmatpush3.msra.mxu0 %v54_v17 }
  0x1d   :  { %220 = vmatprep.subr.mxu0 %v238_v2 }
  0x1e   :  { %221 = vmatpush3.msra.mxu0 %v53_v18 }
  0x1f   :  { %222 = vmatprep.subr.mxu0 %v238_v2 }
  0x20   :  { %223 = vmatpush3.msra.mxu0 %v52_v19 }
  0x7d   :  { %v26_v21 = vpop.permute.xlu0 %25 }
  0x7e   :  { %v32_v22 = vmul.f32 %v171_v20, %v26_v21 }
  0x80   :  { %v39_v26 = vadd.f32 %v172_v23, %v32_v22 }
  0x82   :  { %v43_v25 = vpop.permute.xlu0 %42 }
  0x83   :  { %v49_v27 = vmul.f32 %v173_v24, %v43_v25 }
  0x85   :  { %v50_v28 = vadd.f32 %v49_v27, %v39_v26 }
  0x87   :  { %v51_v29 = vmax.f32 %v50_v28, 0.0 }
  0x89   :  { %225 = vmatmul.mubr.f32.vlgmr.msra.gmra.mxu0 %v51_v29 }
 0x149   :  { %v141_v31 = vpop.f32.mrf.mxu0 }
 0x14a   :  { %v142_v32 = vadd.f32 %v174_v30, %v141_v31 }
 0x14b   :  { %v226_v33 = vpop.f32.mrf.mxu0 }
 0x14c   :  { %v146_v34 = vsel %vm145_vm1, %v142_v32, -inf }
 0x14d   :  { %v147_v35 = vrot.slane %v146_v34, 4 }
 0x14f   :  { %v148_v36 = vmax.f32 %v146_v34, %v147_v35 }
 0x151   :  { %v149_v37 = vrot.slane %v148_v36, 2 }
 0x153   :  { %v150_v38 = vmax.f32 %v148_v36, %v149_v37 }
 0x155   :  { %v151_v39 = vrot.slane %v150_v38, 1 }
 0x157   :  { %v152_v40 = vmax.f32 %v150_v38, %v151_v39 }
 0x159   :  { %v153_v41 = vsub.f32 %v142_v32, %v152_v40 }
 0x15b   :  { %v154_v42 = vmul.f32 1.442695, %v153_v41 }
 0x15d   :  { %233 = vpow2.f32 %v154_v42 }
 0x16a   :  { %v234_v43 = vpop.eup %233 }
 0x16b   :  { %v156_v44 = vsel %vm145_vm1, %v234_v43, 0.0 }
 0x16c   :  { %v157_v45 = vrot.slane %v156_v44, 4 }
 0x16e   :  { %v158_v46 = vadd.f32 %v157_v45, %v156_v44 }
 0x170   :  { %v159_v47 = vrot.slane %v158_v46, 2 }
 0x172   :  { %v160_v48 = vadd.f32 %v159_v47, %v158_v46 }
 0x174   :  { %v161_v49 = vrot.slane %v160_v48, 1 }
 0x176   :  { %v162_v50 = vadd.f32 %v161_v49, %v160_v48 }
 0x178   :  { %235 = vlog2.f32 %v162_v50 }
 0x185   :  { %v236_v51 = vpop.eup %235 }
 0x186   :  { %v164_v52 = vmul.f32 0.6931472, %v236_v51 }
 0x188   :  { %v165_v53 = vsub.f32 %v153_v41, %v164_v52 }
 0x18a   :  { %166 = vst.msk [vmem:[%s345_s5] sm:$0xff] %vm145_vm1, %v165_v53 }

</bundles_post_ra>
